<compile_context>
chip_gen: v5e
topology: v5e:2x2
jax: 0.10.0
libtpu: 0.0.40
codegen_flags: <defaults>
</compile_context>

<pallas_src>
import jax
import jax.numpy as jnp
from jax.experimental import pallas as pl
from jax.experimental.pallas import tpu as pltpu


def _conv_bn_relu_kernel(xT_ref, wT_ref, bias_ref, o_ref):
    # Single MXU contraction over all K*K*Cin taps; output (Cout, N*Ho*Wo) is lane-dense.
    acc = jnp.dot(wT_ref[...], xT_ref[...],
                  preferred_element_type=jnp.float32)          # (Cout, M) f32
    # Fused BN bias (scale already folded into the weights) + ReLU, full-lane VPU ops.
    o_ref[...] = jnp.maximum(acc + bias_ref[...], 0.0).astype(o_ref.dtype)


def conv_basic_forward(x_nchw, weight_oihw, gamma, beta, running_mean, running_var,
                       *, stride=1, padding=1, eps=1e-5):
    N, Cin, H, W = x_nchw.shape
    Cout, _, K, _ = weight_oihw.shape
    Ho = (H + 2 * padding - K) // stride + 1
    Wo = (W + 2 * padding - K) // stride + 1
    KKC = Cin * K * K
    M = N * Ho * Wo                      # 512 for the demo shapes -> lane-dense output

    # ---- BN (eval-mode) folding: scale goes into the weights, shift stays as a bias ----
    inv_std = jax.lax.rsqrt(running_var.astype(jnp.float32) + eps)
    scale = gamma.astype(jnp.float32) * inv_std                              # (Cout,)
    bias = (beta.astype(jnp.float32)
            - running_mean.astype(jnp.float32) * scale).reshape(Cout, 1)     # (Cout, 1) f32
    # Scale multiply in f32, then one bf16 cast (avoids double rounding).
    wT = (weight_oihw.reshape(Cout, KKC).astype(jnp.float32)
          * scale[:, None]).astype(jnp.bfloat16)                             # (Cout, KKC)

    # ---- im2col in the transposed orientation (KKC, M) so the kernel output needs no
    # relayout.  Row order is (cin, kh, kw), matching weight.reshape(Cout, Cin*K*K). ----
    # TODO(synk): for larger MSDNet configs, move this pad + patch-gather + cast into the
    # kernel (manual DMA of the padded image + VMEM patch assembly) to cut wrapper-side
    # HBM round trips; at these toy shapes the whole wrapper is dispatch-overhead bound.
    x_pad = jnp.pad(x_nchw, ((0, 0), (0, 0), (padding, padding), (padding, padding)))
    taps = [x_pad[:, :, kh:kh + stride * Ho:stride, kw:kw + stride * Wo:stride]
            for kh in range(K) for kw in range(K)]            # each (N, Cin, Ho, Wo)
    x_colT = (jnp.stack(taps, axis=2)                         # (N, Cin, K*K, Ho, Wo)
              .transpose(1, 2, 0, 3, 4)                       # (Cin, K*K, N, Ho, Wo)
              .reshape(KKC, M)
              .astype(jnp.bfloat16))

    # Single kernel invocation (no grid): everything fits comfortably in VMEM on
    # v5e / v6e / v7x, so grid steps would be pure loop overhead.
    vmem = pl.BlockSpec(memory_space=pltpu.MemorySpace.VMEM)
    outT = pl.pallas_call(
        _conv_bn_relu_kernel,
        out_shape=jax.ShapeDtypeStruct((Cout, M), jnp.float32),
        in_specs=[vmem, vmem, vmem],
        out_specs=vmem,
    )(x_colT, wT, bias)

    out = outT.reshape(Cout, N, Ho, Wo).transpose(1, 0, 2, 3)                # NCHW
    return out.astype(x_nchw.dtype)


def _reference(x_nchw, weight_oihw, gamma, beta, rm, rv, eps=1e-5):
    y = jax.lax.conv_general_dilated(
        x_nchw, weight_oihw, window_strides=(1, 1), padding=((1, 1), (1, 1)),
        dimension_numbers=("NCHW", "OIHW", "NCHW"),
        precision=jax.lax.Precision.HIGHEST)
    scale = gamma / jnp.sqrt(rv + eps)
    shift = beta - rm * scale
    y = y * scale[None, :, None, None] + shift[None, :, None, None]
    return jnp.maximum(y, 0.0)


if __name__ == "__main__":
    # ConvBasic(nIn=4, nOut=8, kernel=3, stride=1, padding=1)
    N, C_IN, C_OUT, HW, K = 2, 4, 8, 16, 3

    key = jax.random.PRNGKey(0)
    kx, kw, kg, kb, km, kv = jax.random.split(key, 6)

    x = jax.random.normal(kx, (N, C_IN, HW, HW), dtype=jnp.float32)
    # Conv2d weight (bias=False): shape (nOut, nIn, K, K)
    weight = jax.random.normal(kw, (C_OUT, C_IN, K, K), dtype=jnp.float32) * 0.1
    # BatchNorm2d params + running stats (deterministic, non-trivial)
    gamma = 1.0 + 0.1 * jax.random.normal(kg, (C_OUT,), dtype=jnp.float32)
    beta = 0.1 * jax.random.normal(kb, (C_OUT,), dtype=jnp.float32)
    running_mean = 0.1 * jax.random.normal(km, (C_OUT,), dtype=jnp.float32)
    running_var = 1.0 + 0.1 * jax.random.uniform(kv, (C_OUT,), dtype=jnp.float32)

    out = conv_basic_forward(x, weight, gamma, beta, running_mean, running_var)
    out = jax.block_until_ready(out)

    ref = _reference(x, weight, gamma, beta, running_mean, running_var)
    assert out.shape == (N, C_OUT, HW, HW), out.shape
    # bf16 MXU inputs (f32 accumulation) vs the f32 Precision.HIGHEST reference:
    # tolerance loosened accordingly (observed error is well below this).
    assert jnp.allclose(out, ref, atol=5e-2, rtol=5e-2), \
        float(jnp.max(jnp.abs(out - ref)))

    print("KERNEL_OK")
</pallas_src>

<mosaic_0001>
module attributes {stable_mosaic.version = 11 : i64} {
  func.func @_conv_bn_relu_kernel(%arg0: memref<36x512xbf16, #tpu.memory_space<vmem>>, %arg1: memref<8x36xbf16, #tpu.memory_space<vmem>>, %arg2: memref<8x1xf32, #tpu.memory_space<vmem>>, %arg3: memref<8x512xf32, #tpu.memory_space<vmem>>) attributes {dimension_semantics = [], scalar_prefetch = 0 : i64, scratch_operands = 0 : i64, tpu.core_type = #tpu.core_type<tc>} {
    %c0 = arith.constant 0 : index
    %c0_0 = arith.constant 0 : index
    %0 = vector.load %arg1[%c0, %c0_0] : memref<8x36xbf16, #tpu.memory_space<vmem>>, vector<8x36xbf16>
    %c0_1 = arith.constant 0 : index
    %c0_2 = arith.constant 0 : index
    %1 = vector.load %arg0[%c0_1, %c0_2] : memref<36x512xbf16, #tpu.memory_space<vmem>>, vector<36x512xbf16>
    %cst = arith.constant dense<0.000000e+00> : vector<8x512xf32>
    %2 = tpu.matmul %0, %1, %cst {dimension_numbers = #tpu.dot_dimension_numbers<[1], [0], [0], [1], [0, 0, 1, 1], [], []>} : vector<8x36xbf16>, vector<36x512xbf16>, vector<8x512xf32> -> vector<8x512xf32>
    %c0_3 = arith.constant 0 : index
    %c0_4 = arith.constant 0 : index
    %3 = vector.load %arg2[%c0_3, %c0_4] : memref<8x1xf32, #tpu.memory_space<vmem>>, vector<8x1xf32>
    %4 = vector.broadcast %3 : vector<8x1xf32> to vector<8x512xf32>
    %5 = arith.addf %2, %4 : vector<8x512xf32>
    %cst_5 = arith.constant 0.000000e+00 : f32
    %6 = vector.broadcast %cst_5 : f32 to vector<8x512xf32>
    %7 = arith.maximumf %5, %6 : vector<8x512xf32>
    %c0_6 = arith.constant 0 : index
    %c0_7 = arith.constant 0 : index
    %8 = vector.load %arg3[%c0_6, %c0_7] : memref<8x512xf32, #tpu.memory_space<vmem>>, vector<8x512xf32>
    tpu.vector_store %arg3[%c0_6, %c0_7], %7 {strides = array<i32>} : memref<8x512xf32, #tpu.memory_space<vmem>>, vector<8x512xf32>,
    return
  }
}

</mosaic_0001>

<bundles_post_ra>
// kernel: tpu_custom_call.1
= control target key start
LH: loop header
LB: loop body
LE: loop exit
PB: predicated region body
PF: predicated region fallthrough
CT: control target
= control target key end

     0   :  { %8 = vsyncpa [#allocation3], 0  ;;  %s336_s0 = inlined_call_operand.hbm [shape: bf16[36,512], index: 0, kind: input, shape index: {}]   ;;  %s337_s1 = inlined_call_operand.vmem [shape: bf16[8,36], index: 1, kind: input, shape index: {}]   ;;  %s338_s2 = inlined_call_operand.vmem [shape: f32[8,1], index: 2, kind: input, shape index: {}]   ;;  %s339_s3 = inlined_call_operand.hbm [shape: f32[8,512], index: 3, kind: output, shape index: {}]  }
   0x1   :  { %9 = vsyncpa [#allocation4], 0  ;;  %s14_s14 = sshll.u32 %s336_s0, 4  ;;  %s295_s15 = smov [#allocation2]   ;;  %s15_s14 = int_to_ptr.hbm [resolvable:$true] %s14_s14 }
   0x2   :  { %s16_s16 = sshll.u32 %s295_s15, 4  ;;  %s296_s17 = smov 256   ;;  %s17_s16 = int_to_ptr.vmem [resolvable:$true] %s16_s16 }
   0x3   :  { %s297_s18 = smov 16  }
   0x4   :  { %22 = dma.hbm_to_vmem [thread:$0]  %s15_s14, 1280, %s17_s16, [#allocation3], %s296_s17, %s296_s17, %s297_s18  }
   0x5   :  { %291 = dma.done.wait [#allocation3], 1280  }
   0x6   :  { %292 = vsyncadd [#allocation3], 4294966016  ;;  %v298_v0 = vmov 0   ;;  %v41_v1 = vld [vmem:[#allocation2 + $0x40] sm:$0x33]  ;;  %vm103_vm0 = vcmask 1041408  }
   0x7   :  { %242 = vset.pattern.permute.xlu0 %v298_v0  ;;  %v42_v2 = vld [vmem:[#allocation2 + $0x48] sm:$0x33]  ;;  %v75_v3 = vunpack.c.l.b16 %v41_v1  ;;  %v76_v4 = vunpack.c.h.b16 %v41_v1  ;;  %v211_v7 = vld [vmem:[#allocation2 + $0x20] sm:$0xf]  ;;  %v235_v8 = vld [vmem:[#allocation2 + $0x2c] sm:$0xf0] }
   0x8   :  { %v77_v5 = vunpack.c.l.b16 %v42_v2  ;;  %v78_v6 = vunpack.c.h.b16 %v42_v2  ;;  %v233_v13 = vld [vmem:[#allocation2 + $0x24] sm:$0xf]  ;;  %v213_v14 = vld [vmem:[#allocation2 + $0x30] sm:$0xf0]  ;;  %v219_v15 = vld [vmem:[#allocation2 + $0x28] sm:$0xf]  ;;  %v212_v23 = vor.u32 %v235_v8, %v211_v7 }
   0x9   :  { %v87_v9 = vpack.c.b16 %v75_v3, %v75_v3  ;;  %v88_v10 = vpack.c.b16 %v76_v4, %v76_v4  ;;  %v236_v16 = vld [vmem:[#allocation2 + $0x34] sm:$0xf0]  ;;  %v234_v17 = vld [vmem:[#allocation2 + $0x2c] sm:$0xf]  ;;  %v221_v18 = vld [vmem:[#allocation2 + $0x38] sm:$0xf0]  ;;  %v216_v24 = vor.u32 %v233_v13, %v213_v14 }
   0xa   :  { %v89_v11 = vpack.c.b16 %v77_v5, %v77_v5  ;;  %v90_v12 = vpack.c.b16 %v78_v6, %v78_v6  ;;  %v195_v25 = vld [vmem:[#allocation2] sm:$0xf]  ;;  %v231_v26 = vld [vmem:[#allocation2 + $0xc] sm:$0xf0]  ;;  %v229_v27 = vld [vmem:[#allocation2 + $0x4] sm:$0xf]  ;;  %v220_v28 = vor.u32 %v236_v16, %v219_v15  ;;  %v224_v29 = vor.u32 %v234_v17, %v221_v18 }
   0xb   :  { %v105_v19 = vsel %vm103_vm0, %v87_v9, 0  ;;  %v108_v20 = vsel %vm103_vm0, %v88_v10, 0  ;;  %v197_v30 = vld [vmem:[#allocation2 + $0x10] sm:$0xf0]  ;;  %v203_v31 = vld [vmem:[#allocation2 + $0x8] sm:$0xf]  ;;  %v196_v36 = vor.u32 %v231_v26, %v195_v25 }
   0xc   :  { %v111_v21 = vsel %vm103_vm0, %v89_v11, 0  ;;  %v114_v22 = vsel %vm103_vm0, %v90_v12, 0  ;;  %121 = vmatpush.bf16.msra.mxu0 %v105_v19  ;;  %134 = vmatpush.bf16.msra.mxu1 %v108_v20  ;;  %v43_v32 = vld [vmem:[%s338_s2] sm:$0xff]  ;;  %v232_v33 = vld [vmem:[#allocation2 + $0x14] sm:$0xf0]  ;;  %v200_v37 = vor.u32 %v229_v27, %v197_v30  ;;  %vm99_vm1 = vcmask 293888  }
   0xd   :  { %147 = vmatpush.bf16.msra.mxu2 %v111_v21  ;;  %160 = vmatpush.bf16.msra.mxu3 %v114_v22  ;;  %v230_v34 = vld [vmem:[#allocation2 + $0xc] sm:$0xf]  ;;  %v205_v35 = vld [vmem:[#allocation2 + $0x18] sm:$0xf0]  ;;  %v204_v38 = vor.u32 %v232_v33, %v203_v31  ;;  %v32_v40 = vld [vmem:[%s337_s1] sm:$0xf] }
   0xe   :  { %46 = vperm.xlu0 %242, %v43_v32   ;;  %v208_v39 = vor.u32 %v230_v34, %v205_v35  ;;  %s299_s1 = smov [#allocation5]   ;;  %s183_s24 = sshll.u32 %s339_s3, 4  ;;  %s184_s24 = int_to_ptr.hbm [resolvable:$true] %s183_s24 }
   0xf   :  { %s181_s2 = sshll.u32 %s299_s1, 4  ;;  %s182_s2 = int_to_ptr.vmem [resolvable:$true] %s181_s2 }
  0x10   :  { %122 = vmatpush.bf16.msra.mxu0 %v212_v23  ;;  %135 = vmatpush.bf16.msra.mxu1 %v216_v24 }
  0x11   :  { %148 = vmatpush.bf16.msra.mxu2 %v220_v28  ;;  %161 = vmatpush.bf16.msra.mxu3 %v224_v29 }
  0x14   :  { %123 = vmatpush.bf16.msra.mxu0 %v196_v36  ;;  %136 = vmatpush.bf16.msra.mxu1 %v200_v37 }
  0x15   :  { %149 = vmatpush.bf16.msra.mxu2 %v204_v38  ;;  %162 = vmatpush.bf16.msra.mxu3 %v208_v39 }
  0x17   :  { %225 = vmatmul.msk.bf16.vlgmr.msra.gmra.mxu0 %vm99_vm1, %v32_v40  ;;  %226 = vmatmul.msk.bf16.vlgmr.msra.gmra.mxu1 %vm99_vm1, %v32_v40 }
  0x18   :  { %227 = vmatmul.msk.bf16.vlgmr.msra.gmra.mxu2 %vm99_vm1, %v32_v40  ;;  %228 = vmatmul.msk.bf16.vlgmr.msra.gmra.mxu3 %vm99_vm1, %v32_v40 }
  0x80   :  { %v47_v41 = vpop.permute.xlu0 %46 }
  0x94   :  { %v125_v42 = vpop.f32.mrf.mxu0  ;;  %v138_v43 = vpop.f32.mrf.mxu1 }
  0x95   :  { %v126_v44 = vadd.f32 %v125_v42, %v47_v41  ;;  %v139_v45 = vadd.f32 %v138_v43, %v47_v41 }
  0x97   :  { %v168_v46 = vmax.f32 %v126_v44, 0.0  ;;  %v169_v47 = vmax.f32 %v139_v45, 0.0 }
  0x99   :  { %172 = vst [vmem:[#allocation5] sm:$0xff] %v168_v46 }
  0x9a   :  { %173 = vst [vmem:[#allocation5 + $0x8] sm:$0xff] %v169_v47 }
  0x9b   :  { %v151_v48 = vpop.f32.mrf.mxu2  ;;  %v164_v49 = vpop.f32.mrf.mxu3 }
  0x9c   :  { %v152_v50 = vadd.f32 %v151_v48, %v47_v41  ;;  %v165_v51 = vadd.f32 %v164_v49, %v47_v41  ;;  %v127_v52 = vpop.f32.mrf.mxu0  ;;  %v140_v53 = vpop.f32.mrf.mxu1 }
  0x9e   :  { %v170_v54 = vmax.f32 %v152_v50, 0.0  ;;  %v171_v55 = vmax.f32 %v165_v51, 0.0 }
  0xa0   :  { %174 = vst [vmem:[#allocation5 + $0x10] sm:$0xff] %v170_v54 }
  0xa1   :  { %175 = vst [vmem:[#allocation5 + $0x18] sm:$0xff] %v171_v55 }
  0xa2   :  { %186 = dma.vmem_to_hbm [thread:$0]  %s182_s2, 512, %s184_s24, [#allocation4]  }
  0xa3   :  { %v153_v56 = vpop.f32.mrf.mxu2  ;;  %v166_v57 = vpop.f32.mrf.mxu3 }
  0xa4   :  { %293 = dma.done.wait [#allocation4], 512  }
  0xa5   :  { %294 = vsyncadd [#allocation4], 4294966784 }
  0xa6   :  { %191 = vsyncpa [#allocation3], 1 }
  0xa7   :  { %192 = vsyncpa [#allocation4], 1 }

</bundles_post_ra>
